<compile_context>
chip_gen: v7x
topology: tpu7x:2x2x1
jax: 0.10.0
libtpu: 0.0.40
codegen_flags: <defaults>
</compile_context>

<pallas_src>
import jax
import jax.numpy as jnp
import numpy as np
from jax.experimental import pallas as pl
from jax.experimental.pallas import tpu as pltpu

HIDDEN = 32   # rnn_hidden_size
VOCAB = 64    # rnn_output_size


# ----------------------------- Pallas kernel ------------------------------- #
def _decoder_kernel(emb_ref,      # (T, H)   pre-gathered embedding rows
                    feats_ref,    # (1, H)   image features (constant per call)
                    h0_ref,       # (1, H)   initial hidden state
                    c0_ref,       # (1, H)   initial cell state
                    wf_ref,       # (H, H)   input Linear, feats half (transposed)
                    we_ref,       # (H, H)   input Linear, emb half   (transposed)
                    b_in_ref,     # (1, H)   input Linear bias
                    w_ih_ref,     # (H, 4H)  W_ih^T
                    w_hh_ref,     # (H, 4H)  W_hh^T
                    b_g_ref,      # (1, 4H)  b_ih + b_hh
                    w_out_ref,    # (H, VP)  output Linear (vocab padded to VP)
                    b_out_ref,    # (1, VP)  output bias (padded lanes = -1e30)
                    logp_ref,     # out: (T, VP) per-step log-probs
                    h_out_ref,    # out: (1, H)  final hidden state
                    c_out_ref,    # out: (1, H)  final cell state
                    h_all):       # scratch: (T, H)  all hidden states
    T, H = emb_ref.shape

    # ---- pre-loop: state-independent work, batched over all T tokens ----
    # feats never changes across steps -> fold it into an effective bias.
    b_in_eff = (jnp.dot(feats_ref[...], wf_ref[...],
                        preferred_element_type=jnp.float32) + b_in_ref[...])
    x = jnp.maximum(
        jnp.dot(emb_ref[...], we_ref[...],
                preferred_element_type=jnp.float32) + b_in_eff, 0.0)      # (T, H)
    gx = (jnp.dot(x, w_ih_ref[...], preferred_element_type=jnp.float32)
          + b_g_ref[...])                                                 # (T, 4H)

    w_hh = w_hh_ref[...]
    h = h0_ref[...]                                                       # (1, H)
    c = c0_ref[...]                                                       # (1, H)

    # ---- serial recurrence: one tiny MXU push + gate math per token ----
    # T is static and small -> full static unroll (static slices/stores only).
    for t in range(T):
        gates = gx[t:t + 1, :] + jnp.dot(h, w_hh,
                                         preferred_element_type=jnp.float32)  # (1, 4H)
        sig = jax.nn.sigmoid(gates)
        tnh = jnp.tanh(gates)
        i_g = sig[:, 0 * H:1 * H]
        f_g = sig[:, 1 * H:2 * H]
        g_g = tnh[:, 2 * H:3 * H]
        o_g = sig[:, 3 * H:4 * H]
        c = f_g * c + i_g * g_g
        h = o_g * jnp.tanh(c)
        h_all[pl.ds(t, 1), :] = h

    # ---- post-loop: batched output Linear + log-softmax over all steps ----
    logits = (jnp.dot(h_all[...], w_out_ref[...],
                      preferred_element_type=jnp.float32) + b_out_ref[...])   # (T, VP)
    m = jnp.max(logits, axis=-1, keepdims=True)
    shifted = logits - m
    lse = jnp.log(jnp.sum(jnp.exp(shifted), axis=-1, keepdims=True))
    logp_ref[...] = shifted - lse
    h_out_ref[...] = h
    c_out_ref[...] = c


# ------------------------- one-time weight packing -------------------------- #
def pack_params(params):
    """Model-load-time packing: PyTorch (out,in) -> (in,out) transposes,
    feats/emb split of the input Linear, vocab padding to a 128-lane multiple.
    Call once; NOT on the per-token path."""
    V, H = params["emb"].shape
    VP = max(128, ((V + 127) // 128) * 128)
    f32 = jnp.float32

    w_in = params["w_in"].astype(f32)                          # (H, 2H), cat=[feats, emb]
    return {
        "emb": params["emb"].astype(f32),                      # (V, H)
        "w_in_feats_T": w_in[:, :H].T,                         # (H, H)
        "w_in_emb_T": w_in[:, H:].T,                           # (H, H)
        "b_in": params["b_in"].astype(f32).reshape(1, H),
        "w_ih_T": params["w_ih"].T.astype(f32),                # (H, 4H)
        "w_hh_T": params["w_hh"].T.astype(f32),                # (H, 4H)
        "b_gates": (params["b_ih"] + params["b_hh"]).astype(f32).reshape(1, 4 * H),
        "w_out_T": jnp.zeros((H, VP), f32).at[:, :V].set(params["w_out"].T.astype(f32)),
        "b_out": jnp.full((1, VP), -1e30, f32).at[0, :V].set(params["b_out"].astype(f32)),
    }


# ------------------------------- wrappers ----------------------------------- #
@jax.jit
def decoder_forward_seq(packed, feats, tokens, hidden):
    """Fused decode: applies the module's forward T times (teacher forcing with
    the provided token sequence) in ONE pallas_call.  Returns (logp[T,V], (h,c))."""
    emb = packed["emb"]
    V, H = emb.shape
    VP = packed["w_out_T"].shape[1]
    T = tokens.shape[0]

    h0, c0 = hidden
    tok = tokens.astype(jnp.int32).reshape(T)
    emb_seq = jnp.take(emb, tok, axis=0)                       # (T, H) pre-gather
    feats_row = feats.reshape(1, H).astype(jnp.float32)
    h0r = h0.reshape(1, H).astype(jnp.float32)
    c0r = c0.reshape(1, H).astype(jnp.float32)

    vmem = pl.BlockSpec(memory_space=pltpu.MemorySpace.VMEM)

    logp_p, h_new, c_new = pl.pallas_call(
        _decoder_kernel,
        out_shape=(
            jax.ShapeDtypeStruct((T, VP), jnp.float32),
            jax.ShapeDtypeStruct((1, H), jnp.float32),
            jax.ShapeDtypeStruct((1, H), jnp.float32),
        ),
        in_specs=[vmem] * 12,
        out_specs=(vmem, vmem, vmem),
        scratch_shapes=[pltpu.VMEM((T, H), jnp.float32)],      # all hidden states
    )(emb_seq, feats_row, h0r, c0r,
      packed["w_in_feats_T"], packed["w_in_emb_T"], packed["b_in"],
      packed["w_ih_T"], packed["w_hh_T"], packed["b_gates"],
      packed["w_out_T"], packed["b_out"])

    logp = logp_p[:, :V]
    return logp, (h_new.reshape(1, 1, H), c_new.reshape(1, 1, H))


def decoder_forward(packed, feats, token, hidden):
    """Single-step forward, matching Decoder_ShowAndTellRevise.forward."""
    tok = jnp.asarray(token, dtype=jnp.int32).reshape(1)
    logp, hidden = decoder_forward_seq(packed, feats, tok, hidden)
    return logp.reshape(1, -1), hidden


# ------------------------- pure-JAX reference ------------------------------- #
def decoder_forward_ref(params, feats, token, hidden):
    H = params["emb"].shape[1]
    emb = params["emb"][jnp.asarray(token, jnp.int32).reshape(())]  # (H,)
    x = jnp.concatenate([feats.reshape(H), emb], axis=0)            # (2H,)
    x = x @ params["w_in"].T + params["b_in"]
    x = jnp.maximum(x, 0.0)
    h0 = hidden[0].reshape(H)
    c0 = hidden[1].reshape(H)
    gates = (x @ params["w_ih"].T + params["b_ih"]
             + h0 @ params["w_hh"].T + params["b_hh"])
    i_g = jax.nn.sigmoid(gates[0 * H:1 * H])
    f_g = jax.nn.sigmoid(gates[1 * H:2 * H])
    g_g = jnp.tanh(gates[2 * H:3 * H])
    o_g = jax.nn.sigmoid(gates[3 * H:4 * H])
    c_new = f_g * c0 + i_g * g_g
    h_new = o_g * jnp.tanh(c_new)
    logits = h_new @ params["w_out"].T + params["b_out"]
    logp = logits - jax.scipy.special.logsumexp(logits)
    return logp.reshape(1, -1), (h_new.reshape(1, 1, H), c_new.reshape(1, 1, H))


# ----------------------------- param init ----------------------------------- #
def init_params(key, hidden_size, output_size):
    ks = jax.random.split(key, 9)
    s = 0.1
    return {
        "emb": s * jax.random.normal(ks[0], (output_size, hidden_size), jnp.float32),
        "w_in": s * jax.random.normal(ks[1], (hidden_size, 2 * hidden_size), jnp.float32),
        "b_in": s * jax.random.normal(ks[2], (hidden_size,), jnp.float32),
        "w_ih": s * jax.random.normal(ks[3], (4 * hidden_size, hidden_size), jnp.float32),
        "b_ih": s * jax.random.normal(ks[4], (4 * hidden_size,), jnp.float32),
        "w_hh": s * jax.random.normal(ks[5], (4 * hidden_size, hidden_size), jnp.float32),
        "b_hh": s * jax.random.normal(ks[6], (4 * hidden_size,), jnp.float32),
        "w_out": s * jax.random.normal(ks[7], (output_size, hidden_size), jnp.float32),
        "b_out": s * jax.random.normal(ks[8], (output_size,), jnp.float32),
    }


if __name__ == "__main__":
    key = jax.random.PRNGKey(0)
    k_params, k_feats, k_h, k_c = jax.random.split(key, 4)

    params = init_params(k_params, HIDDEN, VOCAB)
    packed = pack_params(params)      # model-load-time packing (hoisted)

    feats = jax.random.normal(k_feats, (1, 1, HIDDEN), jnp.float32)
    hidden0 = (jax.random.normal(k_h, (1, 1, HIDDEN), jnp.float32),
               jax.random.normal(k_c, (1, 1, HIDDEN), jnp.float32))

    # ---- single-step forward (exactly the module's forward) ----
    token = jnp.array([3], dtype=jnp.int32)
    logp, (h1, c1) = decoder_forward(packed, feats, token, hidden0)
    jax.block_until_ready((logp, h1, c1))

    logp_ref, (h_ref_v, c_ref_v) = decoder_forward_ref(params, feats, token, hidden0)
    np.testing.assert_allclose(np.asarray(logp), np.asarray(logp_ref), atol=2e-3, rtol=2e-3)
    np.testing.assert_allclose(np.asarray(h1), np.asarray(h_ref_v), atol=2e-3, rtol=2e-3)
    np.testing.assert_allclose(np.asarray(c1), np.asarray(c_ref_v), atol=2e-3, rtol=2e-3)

    # ---- fused multi-step decode (T applications of forward, one kernel) ----
    T = 8
    tokens = jnp.array([3, 17, 5, 42, 0, 63, 9, 21], dtype=jnp.int32)
    logp_seq, (h_T, c_T) = decoder_forward_seq(packed, feats, tokens, hidden0)
    jax.block_until_ready((logp_seq, h_T, c_T))

    hid = hidden0
    for t in range(T):
        lp_ref, hid = decoder_forward_ref(params, feats, tokens[t], hid)
        np.testing.assert_allclose(np.asarray(logp_seq[t]),
                                   np.asarray(lp_ref).reshape(-1),
                                   atol=2e-3, rtol=2e-3)
    np.testing.assert_allclose(np.asarray(h_T), np.asarray(hid[0]), atol=2e-3, rtol=2e-3)
    np.testing.assert_allclose(np.asarray(c_T), np.asarray(hid[1]), atol=2e-3, rtol=2e-3)

    print("KERNEL_OK")
</pallas_src>

<mosaic_0001>
module attributes {stable_mosaic.version = 11 : i64} {
  func.func @_decoder_kernel(%arg0: memref<1x32xf32, #tpu.memory_space<vmem>>, %arg1: memref<1x32xf32, #tpu.memory_space<vmem>>, %arg2: memref<1x32xf32, #tpu.memory_space<vmem>>, %arg3: memref<1x32xf32, #tpu.memory_space<vmem>>, %arg4: memref<32x32xf32, #tpu.memory_space<vmem>>, %arg5: memref<32x32xf32, #tpu.memory_space<vmem>>, %arg6: memref<1x32xf32, #tpu.memory_space<vmem>>, %arg7: memref<32x128xf32, #tpu.memory_space<vmem>>, %arg8: memref<32x128xf32, #tpu.memory_space<vmem>>, %arg9: memref<1x128xf32, #tpu.memory_space<vmem>>, %arg10: memref<32x128xf32, #tpu.memory_space<vmem>>, %arg11: memref<1x128xf32, #tpu.memory_space<vmem>>, %arg12: memref<1x128xf32, #tpu.memory_space<vmem>>, %arg13: memref<1x32xf32, #tpu.memory_space<vmem>>, %arg14: memref<1x32xf32, #tpu.memory_space<vmem>>, %arg15: memref<1x32xf32, #tpu.memory_space<vmem>>) attributes {dimension_semantics = [], scalar_prefetch = 0 : i64, scratch_operands = 1 : i64, tpu.core_type = #tpu.core_type<tc>} {
    %c0 = arith.constant 0 : index
    %c0_0 = arith.constant 0 : index
    %0 = vector.load %arg1[%c0, %c0_0] : memref<1x32xf32, #tpu.memory_space<vmem>>, vector<1x32xf32>
    %c0_1 = arith.constant 0 : index
    %c0_2 = arith.constant 0 : index
    %1 = vector.load %arg4[%c0_1, %c0_2] : memref<32x32xf32, #tpu.memory_space<vmem>>, vector<32x32xf32>
    %cst = arith.constant dense<0.000000e+00> : vector<1x32xf32>
    %2 = tpu.matmul %0, %1, %cst {dimension_numbers = #tpu.dot_dimension_numbers<[1], [0], [0], [1], [0, 0, 1, 1], [], []>} : vector<1x32xf32>, vector<32x32xf32>, vector<1x32xf32> -> vector<1x32xf32>
    %c0_3 = arith.constant 0 : index
    %c0_4 = arith.constant 0 : index
    %3 = vector.load %arg6[%c0_3, %c0_4] : memref<1x32xf32, #tpu.memory_space<vmem>>, vector<1x32xf32>
    %4 = arith.addf %2, %3 : vector<1x32xf32>
    %c0_5 = arith.constant 0 : index
    %c0_6 = arith.constant 0 : index
    %5 = vector.load %arg0[%c0_5, %c0_6] : memref<1x32xf32, #tpu.memory_space<vmem>>, vector<1x32xf32>
    %c0_7 = arith.constant 0 : index
    %c0_8 = arith.constant 0 : index
    %6 = vector.load %arg5[%c0_7, %c0_8] : memref<32x32xf32, #tpu.memory_space<vmem>>, vector<32x32xf32>
    %cst_9 = arith.constant dense<0.000000e+00> : vector<1x32xf32>
    %7 = tpu.matmul %5, %6, %cst_9 {dimension_numbers = #tpu.dot_dimension_numbers<[1], [0], [0], [1], [0, 0, 1, 1], [], []>} : vector<1x32xf32>, vector<32x32xf32>, vector<1x32xf32> -> vector<1x32xf32>
    %8 = arith.addf %7, %4 : vector<1x32xf32>
    %cst_10 = arith.constant 0.000000e+00 : f32
    %9 = vector.broadcast %cst_10 : f32 to vector<1x32xf32>
    %10 = arith.maximumf %8, %9 : vector<1x32xf32>
    %c0_11 = arith.constant 0 : index
    %c0_12 = arith.constant 0 : index
    %11 = vector.load %arg7[%c0_11, %c0_12] : memref<32x128xf32, #tpu.memory_space<vmem>>, vector<32x128xf32>
    %cst_13 = arith.constant dense<0.000000e+00> : vector<1x128xf32>
    %12 = tpu.matmul %10, %11, %cst_13 {dimension_numbers = #tpu.dot_dimension_numbers<[1], [0], [0], [1], [0, 0, 1, 1], [], []>} : vector<1x32xf32>, vector<32x128xf32>, vector<1x128xf32> -> vector<1x128xf32>
    %c0_14 = arith.constant 0 : index
    %c0_15 = arith.constant 0 : index
    %13 = vector.load %arg9[%c0_14, %c0_15] : memref<1x128xf32, #tpu.memory_space<vmem>>, vector<1x128xf32>
    %14 = arith.addf %12, %13 : vector<1x128xf32>
    %c0_16 = arith.constant 0 : index
    %c0_17 = arith.constant 0 : index
    %15 = vector.load %arg8[%c0_16, %c0_17] : memref<32x128xf32, #tpu.memory_space<vmem>>, vector<32x128xf32>
    %c0_18 = arith.constant 0 : index
    %c0_19 = arith.constant 0 : index
    %16 = vector.load %arg2[%c0_18, %c0_19] : memref<1x32xf32, #tpu.memory_space<vmem>>, vector<1x32xf32>
    %c0_20 = arith.constant 0 : index
    %c0_21 = arith.constant 0 : index
    %17 = vector.load %arg3[%c0_20, %c0_21] : memref<1x32xf32, #tpu.memory_space<vmem>>, vector<1x32xf32>
    %cst_22 = arith.constant dense<0.000000e+00> : vector<1x128xf32>
    %18 = tpu.matmul %16, %15, %cst_22 {dimension_numbers = #tpu.dot_dimension_numbers<[1], [0], [0], [1], [0, 0, 1, 1], [], []>} : vector<1x32xf32>, vector<32x128xf32>, vector<1x128xf32> -> vector<1x128xf32>
    %19 = arith.addf %14, %18 : vector<1x128xf32>
    %20 = arith.negf %19 : vector<1x128xf32>
    %21 = math.exp %20 : vector<1x128xf32>
    %cst_23 = arith.constant 1.000000e+00 : f32
    %22 = vector.broadcast %cst_23 : f32 to vector<1x128xf32>
    %23 = arith.addf %22, %21 : vector<1x128xf32>
    %24 = arith.divf %22, %23 : vector<1x128xf32>
    %25 = math.tanh %19 : vector<1x128xf32>
    %26 = vector.extract_strided_slice %24 {offsets = [0, 0], sizes = [1, 32], strides = [1, 1]} : vector<1x128xf32> to vector<1x32xf32>
    %27 = vector.extract_strided_slice %24 {offsets = [0, 32], sizes = [1, 32], strides = [1, 1]} : vector<1x128xf32> to vector<1x32xf32>
    %28 = vector.extract_strided_slice %25 {offsets = [0, 64], sizes = [1, 32], strides = [1, 1]} : vector<1x128xf32> to vector<1x32xf32>
    %29 = vector.extract_strided_slice %24 {offsets = [0, 96], sizes = [1, 32], strides = [1, 1]} : vector<1x128xf32> to vector<1x32xf32>
    %30 = arith.mulf %27, %17 : vector<1x32xf32>
    %31 = arith.mulf %26, %28 : vector<1x32xf32>
    %32 = arith.addf %30, %31 : vector<1x32xf32>
    %33 = math.tanh %32 : vector<1x32xf32>
    %34 = arith.mulf %29, %33 : vector<1x32xf32>
    %c0_24 = arith.constant 0 : index
    %c0_25 = arith.constant 0 : index
    %35 = vector.load %arg15[%c0_24, %c0_25] : memref<1x32xf32, #tpu.memory_space<vmem>>, vector<1x32xf32>
    tpu.vector_store %arg15[%c0_24, %c0_25], %34 {strides = array<i32>} : memref<1x32xf32, #tpu.memory_space<vmem>>, vector<1x32xf32>,
    %c0_26 = arith.constant 0 : index
    %c0_27 = arith.constant 0 : index
    %36 = vector.load %arg15[%c0_26, %c0_27] : memref<1x32xf32, #tpu.memory_space<vmem>>, vector<1x32xf32>
    %c0_28 = arith.constant 0 : index
    %c0_29 = arith.constant 0 : index
    %37 = vector.load %arg10[%c0_28, %c0_29] : memref<32x128xf32, #tpu.memory_space<vmem>>, vector<32x128xf32>
    %cst_30 = arith.constant dense<0.000000e+00> : vector<1x128xf32>
    %38 = tpu.matmul %36, %37, %cst_30 {dimension_numbers = #tpu.dot_dimension_numbers<[1], [0], [0], [1], [0, 0, 1, 1], [], []>} : vector<1x32xf32>, vector<32x128xf32>, vector<1x128xf32> -> vector<1x128xf32>
    %c0_31 = arith.constant 0 : index
    %c0_32 = arith.constant 0 : index
    %39 = vector.load %arg11[%c0_31, %c0_32] : memref<1x128xf32, #tpu.memory_space<vmem>>, vector<1x128xf32>
    %40 = arith.addf %38, %39 : vector<1x128xf32>
    %cst_33 = arith.constant dense<0xFF800000> : vector<1xf32>
    %41 = vector.multi_reduction <maximumf>, %40, %cst_33 [1] : vector<1x128xf32> to vector<1xf32>
    %42 = vector.shape_cast %41 : vector<1xf32> to vector<1x1xf32>
    %43 = vector.broadcast %42 : vector<1x1xf32> to vector<1x128xf32>
    %44 = arith.subf %40, %43 : vector<1x128xf32>
    %45 = math.exp %44 : vector<1x128xf32>
    %cst_34 = arith.constant dense<0.000000e+00> : vector<1xf32>
    %46 = vector.multi_reduction <add>, %45, %cst_34 [1] : vector<1x128xf32> to vector<1xf32>
    %47 = vector.shape_cast %46 : vector<1xf32> to vector<1x1xf32>
    %48 = math.log %47 : vector<1x1xf32>
    %49 = vector.broadcast %48 : vector<1x1xf32> to vector<1x128xf32>
    %50 = arith.subf %44, %49 : vector<1x128xf32>
    %c0_35 = arith.constant 0 : index
    %c0_36 = arith.constant 0 : index
    %51 = vector.load %arg12[%c0_35, %c0_36] : memref<1x128xf32, #tpu.memory_space<vmem>>, vector<1x128xf32>
    tpu.vector_store %arg12[%c0_35, %c0_36], %50 {strides = array<i32>} : memref<1x128xf32, #tpu.memory_space<vmem>>, vector<1x128xf32>,
    %c0_37 = arith.constant 0 : index
    %c0_38 = arith.constant 0 : index
    %52 = vector.load %arg13[%c0_37, %c0_38] : memref<1x32xf32, #tpu.memory_space<vmem>>, vector<1x32xf32>
    tpu.vector_store %arg13[%c0_37, %c0_38], %34 {strides = array<i32>} : memref<1x32xf32, #tpu.memory_space<vmem>>, vector<1x32xf32>,
    %c0_39 = arith.constant 0 : index
    %c0_40 = arith.constant 0 : index
    %53 = vector.load %arg14[%c0_39, %c0_40] : memref<1x32xf32, #tpu.memory_space<vmem>>, vector<1x32xf32>
    tpu.vector_store %arg14[%c0_39, %c0_40], %32 {strides = array<i32>} : memref<1x32xf32, #tpu.memory_space<vmem>>, vector<1x32xf32>,
    return
  }
}

</mosaic_0001>

<bundles_post_ra>
// kernel: decoder_forward_seq.1
= control target key start
LH: loop header
LB: loop body
LE: loop exit
PB: predicated region body
PF: predicated region fallthrough
CT: control target
= control target key end

     0   :  { %20 = vsyncpa [#allocation4], 0  ;;  %s1119_s0 = inlined_call_operand.vmem [shape: f32[1,32], index: 0, kind: input, shape index: {}]   ;;  %s1120_s1 = inlined_call_operand.vmem [shape: f32[1,32], index: 1, kind: input, shape index: {}]   ;;  %s1121_s2 = inlined_call_operand.vmem [shape: f32[1,32], index: 2, kind: input, shape index: {}]   ;;  %s1122_s3 = inlined_call_operand.vmem [shape: f32[1,32], index: 3, kind: input, shape index: {}]   ;;  %s1123_s4 = inlined_call_operand.vmem [shape: f32[32,32], index: 4, kind: input, shape index: {}]   ;;  %s1124_s5 = inlined_call_operand.vmem [shape: f32[32,32], index: 5, kind: input, shape index: {}]   ;;  %s1125_s6 = inlined_call_operand.hbm [shape: f32[1,32], index: 6, kind: input, shape index: {}]   ;;  %s1126_s7 = inlined_call_operand.vmem [shape: f32[32,128], index: 7, kind: input, shape index: {}]   ;;  %s1127_s8 = inlined_call_operand.vmem [shape: f32[32,128], index: 8, kind: input, shape index: {}]   ;;  %s1128_s9 = inlined_call_operand.hbm [shape: f32[1,128], index: 9, kind: input, shape index: {}]   ;;  %s1129_s10 = inlined_call_operand.vmem [shape: f32[32,128], index: 10, kind: input, shape index: {}]   ;;  %s1130_s11 = inlined_call_operand.hbm [shape: f32[1,128], index: 11, kind: input, shape index: {}]   ;;  %s1131_s12 = inlined_call_operand.hbm [shape: f32[1,128], index: 12, kind: output, shape index: {0}]   ;;  %s1132_s13 = inlined_call_operand.hbm [shape: f32[1,32], index: 13, kind: output, shape index: {1}]   ;;  %s1133_s14 = inlined_call_operand.hbm [shape: f32[1,32], index: 14, kind: output, shape index: {2}]  }
   0x1   :  { %21 = vsyncpa [#allocation7], 0 }
   0x2   :  { %22 = vsyncpa [#allocation5], 0 }
   0x3   :  { %23 = vsyncpa [#allocation11], 0  ;;  %s865_s29 = smov [#allocation6]   ;;  %s866_s15 = smov [#allocation3]  }
   0x4   :  { %s56_s30 = sshll.u32 %s865_s29, 4  ;;  %s42_s16 = sshll.u32 %s866_s15, 4  ;;  %s57_s30 = int_to_ptr.vmem [resolvable:$true] %s56_s30  ;;  %s43_s16 = int_to_ptr.vmem [resolvable:$true] %s42_s16 }
   0x5   :  { %s725_s19 = scalar_lea.hbm %s1128_s9, 16 }
   0x6   :  { %p726_p0 = scmp.ne.s32.totalorder %s1128_s9, %s725_s19  ;;  %p729_p1 = scmp.lt.u32.totalorder %s725_s19, %s1128_s9 }
   0x8   :  { %p731_p2 = pnand %p729_p1, %p726_p0 }
   0xa   :  { %734 = shalt.err (!%p731_p2)
}
   0xb   :  { %s735_s24 = scalar_lea.vmem %s57_s30, 16  ;;  %s739_s25 = scalar_lea.vmem %s57_s30, 32 }
   0xc   :  { %p736_p3 = scmp.ne.s32.totalorder %s57_s30, %s735_s24  ;;  %p740_p4 = scmp.lt.s32.totalorder %s57_s30, %s57_s30 }
   0xd   :  { %p741_p5 = scmp.lt.s32.totalorder %s739_s25, %s735_s24 }
   0xf   :  { %p742_p6 = por %p741_p5, %p740_p4 }
  0x11   :  { %p743_p7 = pnand %p742_p6, %p736_p3 }
  0x13   :  { %746 = shalt.err (!%p743_p7)
}
  0x14   :  { %59 = dma.hbm_to_vmem [thread:$0]  %s1128_s9, 16, %s57_s30, [#allocation7]  }
  0x15   :  { %s747_s15 = scalar_lea.hbm %s1125_s6, 16 }
  0x16   :  { %p748_p8 = scmp.ne.s32.totalorder %s1125_s6, %s747_s15  ;;  %p751_p9 = scmp.lt.u32.totalorder %s747_s15, %s1125_s6 }
  0x18   :  { %p753_p10 = pnand %p751_p9, %p748_p8 }
  0x1a   :  { %756 = shalt.err (!%p753_p10)
}
  0x1b   :  { %s757_s21 = scalar_lea.vmem %s43_s16, 16  ;;  %s761_s22 = scalar_lea.vmem %s43_s16, 32 }
  0x1c   :  { %p758_p11 = scmp.ne.s32.totalorder %s43_s16, %s757_s21  ;;  %p762_p12 = scmp.lt.s32.totalorder %s43_s16, %s43_s16 }
  0x1d   :  { %p763_p13 = scmp.lt.s32.totalorder %s761_s22, %s757_s21 }
  0x1f   :  { %p764_p0 = por %p763_p13, %p762_p12 }
  0x21   :  { %p765_p1 = pnand %p764_p0, %p758_p11 }
  0x23   :  { %768 = shalt.err (!%p765_p1)
}
  0x24   :  { %45 = dma.hbm_to_vmem [thread:$0]  %s1125_s6, 16, %s43_s16, [#allocation4]  }
  0x25   :  { %s867_s23 = smov [#allocation8]   ;;  %s769_s27 = scalar_lea.hbm %s1130_s11, 16 }
  0x26   :  { %s68_s24 = sshll.u32 %s867_s23, 4  ;;  %p770_p2 = scmp.ne.s32.totalorder %s1130_s11, %s769_s27  ;;  %s69_s24 = int_to_ptr.vmem [resolvable:$true] %s68_s24 }
  0x27   :  { %p773_p3 = scmp.lt.u32.totalorder %s769_s27, %s1130_s11 }
  0x29   :  { %p775_p4 = pnand %p773_p3, %p770_p2 }
  0x2b   :  { %778 = shalt.err (!%p775_p4)
}
  0x2c   :  { %s779_s18 = scalar_lea.vmem %s69_s24, 16  ;;  %s783_s6 = scalar_lea.vmem %s69_s24, 32 }
  0x2d   :  { %p780_p5 = scmp.ne.s32.totalorder %s69_s24, %s779_s18  ;;  %p784_p6 = scmp.lt.s32.totalorder %s69_s24, %s69_s24 }
  0x2e   :  { %p785_p7 = scmp.lt.s32.totalorder %s783_s6, %s779_s18 }
  0x30   :  { %p786_p8 = por %p785_p7, %p784_p6 }
  0x32   :  { %p787_p9 = pnand %p786_p8, %p780_p5 }
  0x34   :  { %790 = shalt.err (!%p787_p9)
}
  0x35   :  { %71 = dma.hbm_to_vmem [thread:$0]  %s1130_s11, 16, %s69_s24, [#allocation7]  }
  0x36   :  { %857 = dma.done.wait [#allocation4], 16  }
  0x37   :  { %858 = vsyncadd [#allocation4], 4294967280 }
  0x38   :  { %859 = dma.done.wait [#allocation7], 32  }
  0x39   :  { %860 = vsyncadd [#allocation7], 4294967264  ;;  %v868_v0 = vmov 0.0|0.0   ;;  %vm869_vm0 = vmmov 0   ;;  %v870_v1 = vmov 0.0   ;;  %v82_v2 = vld [vmem:[%s1123_s4] sm:$0xff] }
  0x3a   :  { %665 = vmatprep.subr.bf16.mxu0 %v868_v0  ;;  %618 = vmatprep.mubr.msk.f32.mxu0 %vm869_vm0, %v870_v1  ;;  %v83_v3 = vld [vmem:[%s1123_s4 + $0x8] sm:$0xff]  ;;  %v84_v4 = vld [vmem:[%s1123_s4 + $0x10] sm:$0xff]  ;;  %v85_v6 = vld [vmem:[%s1123_s4 + $0x18] sm:$0xff]  ;;  %vm87_vm1 = vcmask 261120   ;;  %s872_s4 = smov 32   ;;  %vm434_vm2 = vcmask 253952  }
  0x3b   :  { %677 = vmatprep.subr.bf16.mxu1 %v868_v0  ;;  %640 = vmatprep.mubr.msk.f32.mxu1 %vm869_vm0, %v870_v1  ;;  %v666_v5 = vpack.c.bf16 %v83_v3, %v82_v2  ;;  %v669_v7 = vpack.c.bf16 %v85_v6, %v84_v4  ;;  %v240_v8 = vld [vmem:[%s1126_s7] sm:$0xff]  ;;  %v241_v9 = vld [vmem:[%s1126_s7 + $0x8] sm:$0xff]  ;;  %v164_v15 = vld [vmem:[%s1124_s5 + $0x10] sm:$0xff]  ;;  %vm515_vm3 = vcmask 1040384   ;;  %s874_s11 = smov [#allocation10]  }
  0x3c   :  { %v162_v10 = vld [vmem:[%s1124_s5] sm:$0xff]  ;;  %v163_v11 = vld [vmem:[%s1124_s5 + $0x8] sm:$0xff]  ;;  %v678_v12 = vpack.c.bf16 %v241_v9, %v240_v8  ;;  %v165_v16 = vld [vmem:[%s1124_s5 + $0x18] sm:$0xff]  ;;  %s551_s5 = sshll.u32 %s874_s11, 4  ;;  %s552_s5 = int_to_ptr.vmem [resolvable:$true] %s551_s5 }
  0x3d   :  { %667 = vmatpush3.bf16.msra.mxu0 %v666_v5  ;;  %v81_v13 = vld [vmem:[%s1120_s1] sm:$0x1]  ;;  %v672_v14 = vpack.c.bf16 %v163_v11, %v162_v10  ;;  %v675_v17 = vpack.c.bf16 %v165_v16, %v164_v15  ;;  %v242_v19 = vld [vmem:[%s1126_s7 + $0x10] sm:$0xff]  ;;  %v243_v20 = vld [vmem:[%s1126_s7 + $0x18] sm:$0xff]  ;;  %s791_s22 = scalar_lea.vmem %s552_s5, 16  ;;  %s795_s9 = scalar_lea.vmem %s552_s5, 32 }
  0x3e   :  { %668 = vmatprep.subr.bf16.mxu0 %v868_v0  ;;  %679 = vmatpush3.bf16.msra.mxu1 %v678_v12  ;;  %v161_v18 = vld [vmem:[%s1119_s0] sm:$0x1]  ;;  %v681_v21 = vpack.c.bf16 %v243_v20, %v242_v19  ;;  %v86_v22 = vld [vmem:[#allocation3] sm:$0x1]  ;;  %v319_v24 = vld [vmem:[%s1127_s8 + $0x8] sm:$0xff]  ;;  %p792_p10 = scmp.ne.s32.totalorder %s552_s5, %s791_s22  ;;  %p796_p11 = scmp.lt.s32.totalorder %s552_s5, %s552_s5 }
  0x3f   :  { %680 = vmatprep.subr.bf16.mxu1 %v868_v0  ;;  %v318_v23 = vld [vmem:[%s1127_s8] sm:$0xff]  ;;  %v320_v30 = vld [vmem:[%s1127_s8 + $0x10] sm:$0xff]  ;;  %v321_v31 = vld [vmem:[%s1127_s8 + $0x18] sm:$0xff]  ;;  %s871_s8 = smov 64   ;;  %p797_p12 = scmp.lt.s32.totalorder %s795_s9, %s791_s22 }
  0x40   :  { %v684_v28 = vpack.c.bf16 %v319_v24, %v318_v23  ;;  %v687_v32 = vpack.c.bf16 %v321_v31, %v320_v30  ;;  %v322_v33 = vld [vmem:[%s1121_s2] sm:$0x1]  ;;  %v244_v34 = vld [vmem:[#allocation6] sm:$0x1]  ;;  %v438_v52 = vld [vmem:[%s1129_s10 + $0x8] sm:$0xff] }
  0x41   :  { %670 = vmatpush3.bf16.msra.mxu0 %v669_v7  ;;  %v583_v39 = vld [vmem:[%s1122_s3] ss:$0 sm:$0xff]  ;;  %v439_v54 = vld [vmem:[%s1129_s10 + $0x10] sm:$0xff]  ;;  %v440_v55 = vld [vmem:[%s1129_s10 + $0x18] sm:$0xff]  ;;  %p798_p13 = por %p797_p12, %p796_p11 }
  0x42   :  { %671 = vmatprep.subr.bf16.mxu0 %v868_v0  ;;  %682 = vmatpush3.bf16.msra.mxu1 %v681_v21  ;;  %v437_v51 = vld [vmem:[%s1129_s10] sm:$0xff]  ;;  %v693_v56 = vpack.c.bf16 %v440_v55, %v439_v54  ;;  %s873_s10 = smov 96  }
  0x43   :  { %683 = vmatprep.subr.bf16.mxu1 %v868_v0  ;;  %v690_v53 = vpack.c.bf16 %v438_v52, %v437_v51  ;;  %v441_v61 = vld [vmem:[#allocation8] sm:$0x1]  ;;  %p799_p0 = pnand %p798_p13, %p792_p10 }
  0x44   :  { %619 = vmatmul.mubr.msk.f32.vlgmr.msra.gmra.mrb[0].mxu0 %vm87_vm1, %v81_v13 }
  0x45   :  { %673 = vmatpush3.bf16.msra.mxu0 %v672_v14  ;;  %629 = vmatprep.mubr.msk.f32.mxu0 %vm869_vm0, %v870_v1 }
  0x46   :  { %674 = vmatprep.subr.bf16.mxu0 %v868_v0 }
  0x49   :  { %676 = vmatpush3.bf16.msra.mxu0 %v675_v17 }
  0x4a   :  { %689 = vmatprep.subr.bf16.mxu0 %v868_v0 }
  0x4c   :  { %630 = vmatmul.mubr.msk.f32.vlgmr.msra.gmra.mrb[0].mxu0 %vm87_vm1, %v161_v18 }
  0x4d   :  { %662 = vmatprep.mubr.msk.f32.mxu0 %vm869_vm0, %v870_v1  ;;  %691 = vmatpush3.bf16.msra.mxu0 %v690_v53 }
  0x4e   :  { %692 = vmatprep.subr.bf16.mxu0 %v868_v0 }
  0x51   :  { %694 = vmatpush3.bf16.msra.mxu0 %v693_v56 }
 0x11f   :  { %v235_v25 = vpop.f32.mrb[0].mxu0 }
 0x120   :  { %v695_v26 = vadd.f32 %v235_v25, %v86_v22  ;;  %v631_v27 = vpop.f32.mrb[1].mxu0 }
 0x122   :  { %v239_v29 = vmax.f32 %v695_v26, 0.0 }
 0x124   :  { %641 = vmatmul.mubr.msk.f32.vlgmr.msra.gmra.mrb[0].mxu1 %vm87_vm1, %v239_v29 }
 0x125   :  { %685 = vmatpush3.bf16.msra.mxu1 %v684_v28  ;;  %651 = vmatprep.mubr.msk.f32.mxu1 %vm869_vm0, %v870_v1 }
 0x126   :  { %686 = vmatprep.subr.bf16.mxu1 %v868_v0 }
 0x129   :  { %688 = vmatpush3.bf16.msra.mxu1 %v687_v32 }
 0x12c   :  { %652 = vmatmul.mubr.msk.f32.vlgmr.msra.gmra.mrb[0].mxu1 %vm87_vm1, %v322_v33 }
 0x1ff   :  { %v393_v35 = vpop.f32.mrb[0].mxu1 }
 0x200   :  { %v696_v36 = vadd.f32 %v393_v35, %v244_v34  ;;  %v653_v37 = vpop.f32.mrb[1].mxu1 }
 0x202   :  { %713 = vtanh.f32 %v696_v36  ;;  %v582_v40 = vmul.f32 -1.442695, %v696_v36 }
 0x204   :  { %715 = vpow2.f32 %v582_v40 }
 0x20c   :  { %v714_v38 = vpop.eup %713 }
 0x20d   :  { %415 = vrot.lane.b32.xlu0 %v714_v38, %s871_s8 }
 0x20e   :  { %v716_v41 = vpop.eup %715 }
 0x20f   :  { %v401_v42 = vadd.f32 1.0, %v716_v41 }
 0x211   :  { %410 = vrot.lane.b32.xlu0 %v583_v39, %s872_s4  ;;  %717 = vrcp.f32 %v401_v42 }
 0x21b   :  { %v718_v43 = vpop.eup %717 }
 0x27f   :  { %v416_v44 = vpop.permute.xlu0 %415 }
 0x280   :  { %v418_v45 = vmul.f32 %v718_v43, %v416_v44 }
 0x282   :  { %420 = vrot.lane.b32.xlu1 %v418_v45, %s872_s4 }
 0x283   :  { %v411_v46 = vpop.permute.xlu0 %410 }
 0x284   :  { %v413_v47 = vmul.f32 %v718_v43, %v411_v46 }
 0x2f4   :  { %v421_v48 = vpop.permute.xlu1 %420 }
 0x2f5   :  { %v423_v49 = vadd.f32 %v421_v48, %v413_v47 }
 0x2f7   :  { %719 = vtanh.f32 %v423_v49 }
 0x301   :  { %v720_v50 = vpop.eup %719 }
 0x302   :  { %426 = vrot.lane.b32.xlu1 %v720_v50, %s871_s8 }
 0x374   :  { %v427_v57 = vpop.permute.xlu1 %426 }
 0x375   :  { %v429_v58 = vmul.f32 %v718_v43, %v427_v57 }
 0x377   :  { %431 = vrot.lane.b32.xlu0 %v429_v58, %s872_s4 }
 0x3e9   :  { %v432_v59 = vpop.permute.xlu0 %431 }
 0x3ea   :  { %435 = vst.msk [vmem:[#allocation2] sm:$0x1] %vm434_vm2, %v432_v59  ;;  %529 = vst.msk [vmem:[#allocation10] sm:$0x1] %vm434_vm2, %v432_v59 }
 0x3f1   :  { %v436_v60 = vld [vmem:[#allocation2] sm:$0x1] }
 0x3f2   :  { %663 = vmatmul.mubr.msk.f32.vlgmr.msra.gmra.mrb[2].mxu0 %vm87_vm1, %v436_v60 }
 0x4c5   :  { %v511_v62 = vpop.f32.mrb[2].mxu0 }
 0x4c6   :  { %v512_v63 = vadd.f32 %v511_v62, %v441_v61  ;;  %v664_v1 = vpop.f32.mrb[3].mxu0 }
 0x4c8   :  { %v516_v2 = vsel %vm515_vm3, %v512_v63, -inf }
 0x4c9   :  { %517 = vmax.xlane.f32.xlu1 %v516_v2 }
 0x556   :  { %v518_v0 = vpop.xlane.xlu1 %517 }
 0x557   :  { %v519_v3 = vsub.f32 %v512_v63, %v518_v0 }
 0x559   :  { %v520_v4 = vmul.f32 1.442695, %v519_v3 }
 0x55b   :  { %721 = vpow2.f32 %v520_v4 }
 0x565   :  { %v722_v5 = vpop.eup %721 }
 0x566   :  { %v522_v6 = vsel %vm515_vm3, %v722_v5, 0.0 }
 0x567   :  { %523 = vadd.xlane.f32.xlu0 %v522_v6 }
 0x57d   :  { %531 = vrot.lane.b32.xlu0 %v423_v49, %s873_s10 }
 0x57e   :  { %802 = shalt.err (!%p799_p0)
}
 0x57f   :  { %s803_s23 = scalar_lea.hbm %s1132_s13, 16 }
 0x580   :  { %p804_p1 = scmp.ne.s32.totalorder %s1132_s13, %s803_s23  ;;  %p807_p2 = scmp.lt.u32.totalorder %s803_s23, %s1132_s13 }
 0x582   :  { %p809_p3 = pnand %p807_p2, %p804_p1 }
 0x584   :  { %812 = shalt.err (!%p809_p3)
}
 0x585   :  { %554 = dma.vmem_to_hbm [thread:$0]  %s552_s5, 16, %s1132_s13, [#allocation11]  }
 0x586   :  { %s875_s29 = smov [#allocation12]  }
 0x587   :  { %s561_s15 = sshll.u32 %s875_s29, 4  ;;  %s562_s15 = int_to_ptr.vmem [resolvable:$true] %s561_s15 }
 0x588   :  { %s813_s8 = scalar_lea.vmem %s562_s15, 16  ;;  %s817_s17 = scalar_lea.vmem %s562_s15, 32 }
 0x589   :  { %p814_p4 = scmp.ne.s32.totalorder %s562_s15, %s813_s8  ;;  %p818_p5 = scmp.lt.s32.totalorder %s562_s15, %s562_s15 }
 0x58a   :  { %p819_p6 = scmp.lt.s32.totalorder %s817_s17, %s813_s8 }
 0x58c   :  { %p820_p7 = por %p819_p6, %p818_p5 }
 0x58e   :  { %p821_p8 = pnand %p820_p7, %p814_p4 }
 0x5f4   :  { %v524_v7 = vpop.xlane.xlu0 %523 }
 0x5f5   :  { %723 = vlog2.f32 %v524_v7 }
 0x5f8   :  { %v532_v8 = vpop.permute.xlu0 %531 }
 0x5f9   :  { %534 = vst.msk [vmem:[#allocation12] sm:$0x1] %vm434_vm2, %v532_v8 }
 0x5fa   :  { %824 = shalt.err (!%p821_p8)
}
 0x5fb   :  { %s825_s13 = scalar_lea.hbm %s1133_s14, 16 }
 0x5fc   :  { %p826_p9 = scmp.ne.s32.totalorder %s1133_s14, %s825_s13  ;;  %p829_p10 = scmp.lt.u32.totalorder %s825_s13, %s1133_s14 }
 0x5fe   :  { %p831_p11 = pnand %p829_p10, %p826_p9 }
 0x600   :  { %834 = shalt.err (!%p831_p11)
}
 0x601   :  { %564 = dma.vmem_to_hbm [thread:$0]  %s562_s15, 16, %s1133_s14, [#allocation11]   ;;  %v724_v9 = vpop.eup %723 }
 0x602   :  { %s876_s21 = smov [#allocation9]   ;;  %v526_v10 = vmul.f32 0.6931472, %v724_v9 }
 0x603   :  { %s541_s1 = sshll.u32 %s876_s21, 4  ;;  %s542_s1 = int_to_ptr.vmem [resolvable:$true] %s541_s1 }
 0x604   :  { %v527_v11 = vsub.f32 %v519_v3, %v526_v10  ;;  %s835_s10 = scalar_lea.vmem %s542_s1, 16  ;;  %s839_s11 = scalar_lea.vmem %s542_s1, 32 }
 0x605   :  { %p836_p12 = scmp.ne.s32.totalorder %s542_s1, %s835_s10  ;;  %p840_p13 = scmp.lt.s32.totalorder %s542_s1, %s542_s1 }
 0x606   :  { %528 = vst [vmem:[#allocation9] sm:$0x1] %v527_v11  ;;  %p841_p0 = scmp.lt.s32.totalorder %s839_s11, %s835_s10 }
 0x608   :  { %p842_p1 = por %p841_p0, %p840_p13 }
 0x60a   :  { %p843_p2 = pnand %p842_p1, %p836_p12 }
 0x60c   :  { %846 = shalt.err (!%p843_p2)
}
 0x60d   :  { %s847_s9 = scalar_lea.hbm %s1131_s12, 16 }
 0x60e   :  { %p848_p3 = scmp.ne.s32.totalorder %s1131_s12, %s847_s9  ;;  %p851_p4 = scmp.lt.u32.totalorder %s847_s9, %s1131_s12 }
 0x610   :  { %p853_p5 = pnand %p851_p4, %p848_p3 }
 0x612   :  { %856 = shalt.err (!%p853_p5)
}
 0x613   :  { %544 = dma.vmem_to_hbm [thread:$0]  %s542_s1, 16, %s1131_s12, [#allocation5]  }
 0x614   :  { %861 = dma.done.wait [#allocation5], 16  }
 0x615   :  { %862 = vsyncadd [#allocation5], 4294967280 }
 0x616   :  { %863 = dma.done.wait [#allocation11], 32  }
 0x617   :  { %864 = vsyncadd [#allocation11], 4294967264 }
 0x618   :  { %574 = vsyncpa [#allocation4], 1 }
 0x619   :  { %575 = vsyncpa [#allocation7], 1 }
 0x61a   :  { %576 = vsyncpa [#allocation5], 1 }
 0x61b   :  { %577 = vsyncpa [#allocation11], 1 }

</bundles_post_ra>
